<compile_context>
chip_gen: v7x
topology: tpu7x:2x2x1
jax: 0.10.0
libtpu: 0.0.40
codegen_flags: <defaults>
</compile_context>

<pallas_src>
import functools

import jax
import jax.numpy as jnp
from jax.experimental import pallas as pl
from jax.experimental.pallas import tpu as pltpu

INPUT_SIZE = 57
HIDDEN1 = 64
HIDDEN2 = 64
NUM_CLASSES = 2

K_PAD = 64  # fc1 contraction dim padded 57 -> 64 (inside the kernel)


def _mlp_kernel(x_ref, w1_ref, b1_ref, w2_ref, b2_ref, w3_ref, b3_ref,
                o_ref, xpad_ref):
    # --- pad x tile 57 -> 64 columns in VMEM (columns 57..63 are zero) -------
    # Zero every step (not just step 0) so the kernel remains correct when the
    # "parallel" batch axis is sharded across TensorCores, each with its own
    # scratch buffer.  Rows 57..63 of w1 are zero-padded in the wrapper.
    xpad_ref[...] = jnp.zeros_like(xpad_ref)
    xpad_ref[:, :INPUT_SIZE] = x_ref[...]
    x = xpad_ref[...]                                               # (TB, 64)

    # fc1 + ReLU  (f32 accumulation regardless of compute dtype)
    h1 = jnp.dot(x, w1_ref[...], preferred_element_type=jnp.float32)
    h1 = jnp.maximum(h1 + b1_ref[...], 0.0)                         # (TB, 64)

    # fc2 + ReLU
    h2 = jnp.dot(h1.astype(w2_ref.dtype), w2_ref[...],
                 preferred_element_type=jnp.float32)
    h2 = jnp.maximum(h2 + b2_ref[...], 0.0)                         # (TB, 64)

    # fc3 (no activation)
    out = jnp.dot(h2.astype(w3_ref.dtype), w3_ref[...],
                  preferred_element_type=jnp.float32)
    o_ref[...] = (out + b3_ref[...]).astype(o_ref.dtype)            # (TB, 2)


@functools.partial(jax.jit, static_argnames=("tile_b",))
def net_forward(x, params, *, tile_b=2048):
    """Fused MLP forward. x: (B, 57) f32/bf16 -> (B, 2) float32."""
    w1, b1, w2, b2, w3, b3 = params
    B = x.shape[0]
    compute_dtype = x.dtype          # compute dtype follows the x stream

    # --- tiny one-time weight prep (NOT a pass over the x stream) -----------
    w1_p = jnp.pad(w1, ((0, K_PAD - INPUT_SIZE), (0, 0))).astype(compute_dtype)
    w2_c = w2.astype(compute_dtype)
    w3_c = w3.astype(compute_dtype)
    b1_r = b1.reshape(1, HIDDEN1).astype(jnp.float32)
    b2_r = b2.reshape(1, HIDDEN2).astype(jnp.float32)
    b3_r = b3.reshape(1, NUM_CLASSES).astype(jnp.float32)

    # --- batch tiling --------------------------------------------------------
    # Single block covering the whole batch when it fits (block dim == full dim
    # is always legal); otherwise a multiple-of-8 tile with a ragged last block.
    if B <= tile_b:
        tile = B
    else:
        tile = max(8, (tile_b // 8) * 8)
    grid = (pl.cdiv(B, tile),)

    # --- advisory cost model --------------------------------------------------
    flops = 2 * B * (INPUT_SIZE * HIDDEN1 + HIDDEN1 * HIDDEN2
                     + HIDDEN2 * NUM_CLASSES)
    bytes_accessed = (
        B * INPUT_SIZE * x.dtype.itemsize           # x stream in
        + B * NUM_CLASSES * 4                       # out stream
        + w1_p.size * w1_p.dtype.itemsize
        + w2_c.size * w2_c.dtype.itemsize
        + w3_c.size * w3_c.dtype.itemsize
        + (b1_r.size + b2_r.size + b3_r.size) * 4
    )

    out = pl.pallas_call(
        _mlp_kernel,
        out_shape=jax.ShapeDtypeStruct((B, NUM_CLASSES), jnp.float32),
        grid=grid,
        in_specs=[
            pl.BlockSpec((tile, INPUT_SIZE), lambda i: (i, 0)),       # x: streamed
            pl.BlockSpec((K_PAD, HIDDEN1), lambda i: (0, 0)),         # w1: resident
            pl.BlockSpec((1, HIDDEN1), lambda i: (0, 0)),             # b1: resident
            pl.BlockSpec((HIDDEN1, HIDDEN2), lambda i: (0, 0)),       # w2: resident
            pl.BlockSpec((1, HIDDEN2), lambda i: (0, 0)),             # b2: resident
            pl.BlockSpec((HIDDEN2, NUM_CLASSES), lambda i: (0, 0)),   # w3: resident
            pl.BlockSpec((1, NUM_CLASSES), lambda i: (0, 0)),         # b3: resident
        ],
        out_specs=pl.BlockSpec((tile, NUM_CLASSES), lambda i: (i, 0)),
        scratch_shapes=[pltpu.VMEM((tile, K_PAD), compute_dtype)],
        compiler_params=pltpu.CompilerParams(
            dimension_semantics=("parallel",),
            vmem_limit_bytes=32 * 1024 * 1024,
        ),
        cost_estimate=pl.CostEstimate(
            flops=flops, transcendentals=0, bytes_accessed=bytes_accessed),
    )(x, w1_p, b1_r, w2_c, b2_r, w3_c, b3_r)

    return out


def init_params(key):
    """Deterministic parameter init (uniform, PyTorch-Linear-style bounds)."""
    k = jax.random.split(key, 6)

    def lin(kw, kb, fan_in, fan_out):
        bound = 1.0 / jnp.sqrt(fan_in)
        w = jax.random.uniform(kw, (fan_in, fan_out), jnp.float32, -bound, bound)
        b = jax.random.uniform(kb, (1, fan_out), jnp.float32, -bound, bound)
        return w, b

    w1, b1 = lin(k[0], k[1], INPUT_SIZE, HIDDEN1)
    w2, b2 = lin(k[2], k[3], HIDDEN1, HIDDEN2)
    w3, b3 = lin(k[4], k[5], HIDDEN2, NUM_CLASSES)
    return (w1, b1, w2, b2, w3, b3)


def reference_forward(x, params):
    """Plain-JAX reference for correctness checking."""
    w1, b1, w2, b2, w3, b3 = params
    h1 = jnp.maximum(x @ w1 + b1, 0.0)
    h2 = jnp.maximum(h1 @ w2 + b2, 0.0)
    return h2 @ w3 + b3


if __name__ == "__main__":
    key = jax.random.PRNGKey(0)
    k_x, k_p, k_x2 = jax.random.split(key, 3)
    params = init_params(k_p)

    # f32 path, small batch (single tile).
    batch = 8
    x = jax.random.normal(k_x, (batch, INPUT_SIZE), jnp.float32)
    out = jax.block_until_ready(net_forward(x, params))
    ref = reference_forward(x, params)
    assert out.shape == (batch, NUM_CLASSES)
    assert jnp.allclose(out, ref, atol=1e-5, rtol=1e-5)

    # f32 path, ragged batch over multiple grid steps (partial last block).
    batch2 = 200
    x2 = jax.random.normal(k_x2, (batch2, INPUT_SIZE), jnp.float32)
    out2 = jax.block_until_ready(net_forward(x2, params, tile_b=64))
    ref2 = reference_forward(x2, params)
    assert out2.shape == (batch2, NUM_CLASSES)
    assert jnp.allclose(out2, ref2, atol=1e-5, rtol=1e-5)

    # bf16 x-stream path (halves the dominant HBM bytes); looser tolerance.
    out3 = jax.block_until_ready(
        net_forward(x2.astype(jnp.bfloat16), params, tile_b=64))
    assert out3.dtype == jnp.float32
    assert jnp.allclose(out3, ref2, atol=5e-2, rtol=5e-2)

    print("KERNEL_OK")
</pallas_src>

<mosaic_0001>
module attributes {stable_mosaic.version = 11 : i64} {
  func.func @_mlp_kernel(%arg0: i32, %arg1: memref<8x57xf32, #tpu.memory_space<vmem>>, %arg2: memref<64x64xf32, #tpu.memory_space<vmem>>, %arg3: memref<1x64xf32, #tpu.memory_space<vmem>>, %arg4: memref<64x64xf32, #tpu.memory_space<vmem>>, %arg5: memref<1x64xf32, #tpu.memory_space<vmem>>, %arg6: memref<64x2xf32, #tpu.memory_space<vmem>>, %arg7: memref<1x2xf32, #tpu.memory_space<vmem>>, %arg8: memref<8x2xf32, #tpu.memory_space<vmem>>, %arg9: memref<8x64xf32, #tpu.memory_space<vmem>>) attributes {dimension_semantics = [#tpu.dimension_semantics<parallel>], iteration_bounds = array<i64: 1>, scalar_prefetch = 0 : i64, scratch_operands = 1 : i64, tpu.core_type = #tpu.core_type<tc>, window_params = [{transform_indices = @transform_0, window_bounds = array<i64: 8, 57>}, {pipeline_mode = #tpu.pipeline_mode<synchronous>, transform_indices = @transform_1, window_bounds = array<i64: 64, 64>}, {pipeline_mode = #tpu.pipeline_mode<synchronous>, transform_indices = @transform_2, window_bounds = array<i64: 1, 64>}, {pipeline_mode = #tpu.pipeline_mode<synchronous>, transform_indices = @transform_3, window_bounds = array<i64: 64, 64>}, {pipeline_mode = #tpu.pipeline_mode<synchronous>, transform_indices = @transform_4, window_bounds = array<i64: 1, 64>}, {pipeline_mode = #tpu.pipeline_mode<synchronous>, transform_indices = @transform_5, window_bounds = array<i64: 64, 2>}, {pipeline_mode = #tpu.pipeline_mode<synchronous>, transform_indices = @transform_6, window_bounds = array<i64: 1, 2>}, {transform_indices = @transform_7, window_bounds = array<i64: 8, 2>}]} {
    %cst = arith.constant 0.000000e+00 : f32
    %0 = vector.broadcast %cst : f32 to vector<8x64xf32>
    %c0 = arith.constant 0 : index
    %c0_0 = arith.constant 0 : index
    %1 = vector.load %arg9[%c0, %c0_0] : memref<8x64xf32, #tpu.memory_space<vmem>>, vector<8x64xf32>
    tpu.vector_store %arg9[%c0, %c0_0], %0 {strides = array<i32>} : memref<8x64xf32, #tpu.memory_space<vmem>>, vector<8x64xf32>,
    %c0_1 = arith.constant 0 : index
    %c0_2 = arith.constant 0 : index
    %2 = vector.load %arg1[%c0_1, %c0_2] : memref<8x57xf32, #tpu.memory_space<vmem>>, vector<8x57xf32>
    %c0_3 = arith.constant 0 : index
    %c0_4 = arith.constant 0 : index
    %3 = vector.load %arg9[%c0_3, %c0_4] : memref<8x64xf32, #tpu.memory_space<vmem>>, vector<8x57xf32>
    tpu.vector_store %arg9[%c0_3, %c0_4], %2 {strides = array<i32>} : memref<8x64xf32, #tpu.memory_space<vmem>>, vector<8x57xf32>,
    %c0_5 = arith.constant 0 : index
    %c0_6 = arith.constant 0 : index
    %4 = vector.load %arg9[%c0_5, %c0_6] : memref<8x64xf32, #tpu.memory_space<vmem>>, vector<8x64xf32>
    %c0_7 = arith.constant 0 : index
    %c0_8 = arith.constant 0 : index
    %5 = vector.load %arg2[%c0_7, %c0_8] : memref<64x64xf32, #tpu.memory_space<vmem>>, vector<64x64xf32>
    %cst_9 = arith.constant dense<0.000000e+00> : vector<8x64xf32>
    %6 = tpu.matmul %4, %5, %cst_9 {dimension_numbers = #tpu.dot_dimension_numbers<[1], [0], [0], [1], [0, 0, 1, 1], [], []>} : vector<8x64xf32>, vector<64x64xf32>, vector<8x64xf32> -> vector<8x64xf32>
    %c0_10 = arith.constant 0 : index
    %c0_11 = arith.constant 0 : index
    %7 = vector.load %arg3[%c0_10, %c0_11] : memref<1x64xf32, #tpu.memory_space<vmem>>, vector<1x64xf32>
    %8 = vector.broadcast %7 : vector<1x64xf32> to vector<8x64xf32>
    %9 = arith.addf %6, %8 : vector<8x64xf32>
    %cst_12 = arith.constant 0.000000e+00 : f32
    %10 = vector.broadcast %cst_12 : f32 to vector<8x64xf32>
    %11 = arith.maximumf %9, %10 : vector<8x64xf32>
    %c0_13 = arith.constant 0 : index
    %c0_14 = arith.constant 0 : index
    %12 = vector.load %arg4[%c0_13, %c0_14] : memref<64x64xf32, #tpu.memory_space<vmem>>, vector<64x64xf32>
    %cst_15 = arith.constant dense<0.000000e+00> : vector<8x64xf32>
    %13 = tpu.matmul %11, %12, %cst_15 {dimension_numbers = #tpu.dot_dimension_numbers<[1], [0], [0], [1], [0, 0, 1, 1], [], []>} : vector<8x64xf32>, vector<64x64xf32>, vector<8x64xf32> -> vector<8x64xf32>
    %c0_16 = arith.constant 0 : index
    %c0_17 = arith.constant 0 : index
    %14 = vector.load %arg5[%c0_16, %c0_17] : memref<1x64xf32, #tpu.memory_space<vmem>>, vector<1x64xf32>
    %15 = vector.broadcast %14 : vector<1x64xf32> to vector<8x64xf32>
    %16 = arith.addf %13, %15 : vector<8x64xf32>
    %cst_18 = arith.constant 0.000000e+00 : f32
    %17 = vector.broadcast %cst_18 : f32 to vector<8x64xf32>
    %18 = arith.maximumf %16, %17 : vector<8x64xf32>
    %c0_19 = arith.constant 0 : index
    %c0_20 = arith.constant 0 : index
    %19 = vector.load %arg6[%c0_19, %c0_20] : memref<64x2xf32, #tpu.memory_space<vmem>>, vector<64x2xf32>
    %cst_21 = arith.constant dense<0.000000e+00> : vector<8x2xf32>
    %20 = tpu.matmul %18, %19, %cst_21 {dimension_numbers = #tpu.dot_dimension_numbers<[1], [0], [0], [1], [0, 0, 1, 1], [], []>} : vector<8x64xf32>, vector<64x2xf32>, vector<8x2xf32> -> vector<8x2xf32>
    %c0_22 = arith.constant 0 : index
    %c0_23 = arith.constant 0 : index
    %21 = vector.load %arg7[%c0_22, %c0_23] : memref<1x2xf32, #tpu.memory_space<vmem>>, vector<1x2xf32>
    %22 = vector.broadcast %21 : vector<1x2xf32> to vector<8x2xf32>
    %23 = arith.addf %20, %22 : vector<8x2xf32>
    %c0_24 = arith.constant 0 : index
    %c0_25 = arith.constant 0 : index
    %24 = vector.load %arg8[%c0_24, %c0_25] : memref<8x2xf32, #tpu.memory_space<vmem>>, vector<8x2xf32>
    tpu.vector_store %arg8[%c0_24, %c0_25], %23 {strides = array<i32>} : memref<8x2xf32, #tpu.memory_space<vmem>>, vector<8x2xf32>,
    return
  }
  func.func @transform_0(%arg0: i32) -> (i32, i32) {
    %c0_i32 = arith.constant 0 : i32
    %c0_i32_0 = arith.constant 0 : i32
    return %arg0, %c0_i32 : i32, i32
  }
  func.func @transform_1(%arg0: i32) -> (i32, i32) {
    %c0_i32 = arith.constant 0 : i32
    %c0_i32_0 = arith.constant 0 : i32
    %c0_i32_1 = arith.constant 0 : i32
    return %c0_i32, %c0_i32_0 : i32, i32
  }
  func.func @transform_2(%arg0: i32) -> (i32, i32) {
    %c0_i32 = arith.constant 0 : i32
    %c0_i32_0 = arith.constant 0 : i32
    %c0_i32_1 = arith.constant 0 : i32
    return %c0_i32, %c0_i32_0 : i32, i32
  }
  func.func @transform_3(%arg0: i32) -> (i32, i32) {
    %c0_i32 = arith.constant 0 : i32
    %c0_i32_0 = arith.constant 0 : i32
    %c0_i32_1 = arith.constant 0 : i32
    return %c0_i32, %c0_i32_0 : i32, i32
  }
  func.func @transform_4(%arg0: i32) -> (i32, i32) {
    %c0_i32 = arith.constant 0 : i32
    %c0_i32_0 = arith.constant 0 : i32
    %c0_i32_1 = arith.constant 0 : i32
    return %c0_i32, %c0_i32_0 : i32, i32
  }
  func.func @transform_5(%arg0: i32) -> (i32, i32) {
    %c0_i32 = arith.constant 0 : i32
    %c0_i32_0 = arith.constant 0 : i32
    %c0_i32_1 = arith.constant 0 : i32
    return %c0_i32, %c0_i32_0 : i32, i32
  }
  func.func @transform_6(%arg0: i32) -> (i32, i32) {
    %c0_i32 = arith.constant 0 : i32
    %c0_i32_0 = arith.constant 0 : i32
    %c0_i32_1 = arith.constant 0 : i32
    return %c0_i32, %c0_i32_0 : i32, i32
  }
  func.func @transform_7(%arg0: i32) -> (i32, i32) {
    %c0_i32 = arith.constant 0 : i32
    %c0_i32_0 = arith.constant 0 : i32
    return %arg0, %c0_i32 : i32, i32
  }
}

</mosaic_0001>

<bundles_post_ra>
// kernel: net_forward.1
= control target key start
LH: loop header
LB: loop body
LE: loop exit
PB: predicated region body
PF: predicated region fallthrough
CT: control target
= control target key end

     0   :  { %vm26_vm0 = vcmask 523264   ;;  %v433_v0 = vmov 0.0|0.0   ;;  %vm434_vm1 = vmmov 0   ;;  %v435_v4 = vmov 0.0   ;;  %s582_s1 = inlined_call_operand.vmem [shape: f32[64,64], index: 1, kind: input, shape index: {}]   ;;  %s583_s0 = inlined_call_operand.vmem [shape: f32[8,57], index: 0, kind: input, shape index: {}]   ;;  %s584_s3 = inlined_call_operand.vmem [shape: f32[64,64], index: 3, kind: input, shape index: {}]   ;;  %s585_s5 = inlined_call_operand.vmem [shape: f32[64,2], index: 5, kind: input, shape index: {}]   ;;  %s586_s2 = inlined_call_operand.vmem [shape: f32[1,64], index: 2, kind: input, shape index: {}]   ;;  %s587_s4 = inlined_call_operand.vmem [shape: f32[1,64], index: 4, kind: input, shape index: {}]   ;;  %s588_s6 = inlined_call_operand.vmem [shape: f32[1,2], index: 6, kind: input, shape index: {}]   ;;  %s589_s7 = inlined_call_operand.vmem [shape: f32[8,2], index: 7, kind: output, shape index: {}]  }
   0x1   :  { %394 = vmatprep.subr.bf16.mxu0 %v433_v0  ;;  %v32_v1 = vld [vmem:[%s582_s1] sm:$0xff]  ;;  %v33_v2 = vld [vmem:[%s582_s1 + $0x8] sm:$0xff]  ;;  %v34_v3 = vld [vmem:[%s582_s1 + $0x10] sm:$0xff]  ;;  %353 = vmatprep.mubr.msk.f32.mxu0 %vm434_vm1, %v435_v4  ;;  %27 = vst.msk [vmem:[#allocation2] sm:$0xff] %vm26_vm0, %v435_v4  ;;  %vm29_vm2 = vcmask 465920   ;;  %vm298_vm3 = vcmask 15360  }
   0x2   :  { %v395_v5 = vpack.c.bf16 %v33_v2, %v32_v1  ;;  %v35_v6 = vld [vmem:[%s582_s1 + $0x18] sm:$0xff]  ;;  %406 = vmatprep.subr.bf16.mxu1 %v433_v0  ;;  %372 = vmatprep.mubr.msk.f32.mxu1 %vm434_vm1, %v435_v4  ;;  %v28_v7 = vld [vmem:[%s583_s0] sm:$0xff]  ;;  %v122_v10 = vld [vmem:[%s584_s3 + $0x8] sm:$0xff] }
   0x3   :  { %v398_v8 = vpack.c.bf16 %v35_v6, %v34_v3  ;;  %30 = vst.msk [vmem:[#allocation2] sm:$0xff] %vm29_vm2, %v28_v7  ;;  %v121_v9 = vld [vmem:[%s584_s3] sm:$0xff]  ;;  %v123_v11 = vld [vmem:[%s584_s3 + $0x10] sm:$0xff]  ;;  %v37_v13 = vld [vmem:[%s582_s1 + $0x28] sm:$0xff] }
   0x4   :  { %396 = vmatpush3.bf16.msra.mxu0 %v395_v5  ;;  %v36_v12 = vld [vmem:[%s582_s1 + $0x20] sm:$0xff]  ;;  %v407_v14 = vpack.c.bf16 %v122_v10, %v121_v9  ;;  %v124_v15 = vld [vmem:[%s584_s3 + $0x18] sm:$0xff]  ;;  %v126_v19 = vld [vmem:[%s584_s3 + $0x28] sm:$0xff] }
   0x5   :  { %397 = vmatprep.subr.bf16.mxu0 %v433_v0  ;;  %v410_v16 = vpack.c.bf16 %v124_v15, %v123_v11  ;;  %v401_v17 = vpack.c.bf16 %v37_v13, %v36_v12  ;;  %v125_v18 = vld [vmem:[%s584_s3 + $0x20] sm:$0xff]  ;;  %v38_v20 = vld [vmem:[%s582_s1 + $0x30] sm:$0xff]  ;;  %v39_v21 = vld [vmem:[%s582_s1 + $0x38] sm:$0xff] }
   0x6   :  { %408 = vmatpush3.bf16.msra.mxu1 %v407_v14  ;;  %v413_v22 = vpack.c.bf16 %v126_v19, %v125_v18  ;;  %v404_v23 = vpack.c.bf16 %v39_v21, %v38_v20  ;;  %v127_v25 = vld [vmem:[%s584_s3 + $0x30] sm:$0xff]  ;;  %v128_v26 = vld [vmem:[%s584_s3 + $0x38] sm:$0xff]  ;;  %v210_v28 = vld [vmem:[%s585_s5] sm:$0xff] }
   0x7   :  { %409 = vmatprep.subr.bf16.mxu1 %v433_v0  ;;  %v416_v27 = vpack.c.bf16 %v128_v26, %v127_v25  ;;  %v211_v29 = vld [vmem:[%s585_s5 + $0x8] sm:$0xff]  ;;  %v212_v30 = vld [vmem:[%s585_s5 + $0x10] sm:$0xff]  ;;  %v213_v32 = vld [vmem:[%s585_s5 + $0x18] sm:$0xff] }
   0x8   :  { %399 = vmatpush3.bf16.msra.mxu0 %v398_v8  ;;  %v419_v31 = vpack.c.bf16 %v211_v29, %v210_v28  ;;  %v422_v33 = vpack.c.bf16 %v213_v32, %v212_v30  ;;  %v214_v34 = vld [vmem:[%s585_s5 + $0x20] sm:$0xff]  ;;  %v215_v35 = vld [vmem:[%s585_s5 + $0x28] sm:$0xff]  ;;  %v216_v42 = vld [vmem:[%s585_s5 + $0x30] sm:$0xff] }
   0x9   :  { %400 = vmatprep.subr.bf16.mxu0 %v433_v0  ;;  %v425_v36 = vpack.c.bf16 %v215_v35, %v214_v34  ;;  %v304_v37 = vld [vmem:[%s586_s2] ss:$0 sm:$0xff]  ;;  %v217_v43 = vld [vmem:[%s585_s5 + $0x38] sm:$0xff] }
   0xa   :  { %411 = vmatpush3.bf16.msra.mxu1 %v410_v16  ;;  %v31_v24 = vld [vmem:[#allocation2] sm:$0xff]  ;;  %v428_v44 = vpack.c.bf16 %v217_v43, %v216_v42 }
   0xb   :  { %412 = vmatprep.subr.bf16.mxu1 %v433_v0  ;;  %v306_v45 = vld [vmem:[%s587_s4] ss:$0 sm:$0xff] }
   0xc   :  { %402 = vmatpush3.bf16.msra.mxu0 %v401_v17  ;;  %v308_v50 = vld [vmem:[%s588_s6] ss:$0 sm:$0xff] }
   0xd   :  { %403 = vmatprep.subr.bf16.mxu0 %v433_v0 }
   0xe   :  { %414 = vmatpush3.bf16.msra.mxu1 %v413_v22 }
   0xf   :  { %415 = vmatprep.subr.bf16.mxu1 %v433_v0 }
  0x10   :  { %405 = vmatpush3.bf16.msra.mxu0 %v404_v23 }
  0x11   :  { %418 = vmatprep.subr.bf16.mxu0 %v433_v0 }
  0x12   :  { %417 = vmatpush3.bf16.msra.mxu1 %v416_v27 }
  0x13   :  { %354 = vmatmul.mubr.msk.f32.vlgmr.msra.gmra.mrb[0].mxu0 %vm26_vm0, %v31_v24 }
  0x14   :  { %391 = vmatprep.mubr.msk.f32.mxu0 %vm434_vm1, %v435_v4  ;;  %420 = vmatpush3.bf16.msra.mxu0 %v419_v31 }
  0x15   :  { %421 = vmatprep.subr.bf16.mxu0 %v433_v0 }
  0x18   :  { %423 = vmatpush3.bf16.msra.mxu0 %v422_v33 }
  0x19   :  { %424 = vmatprep.subr.bf16.mxu0 %v433_v0 }
  0x1c   :  { %426 = vmatpush3.bf16.msra.mxu0 %v425_v36 }
  0x1d   :  { %427 = vmatprep.subr.bf16.mxu0 %v433_v0 }
  0x20   :  { %429 = vmatpush3.bf16.msra.mxu0 %v428_v44 }
  0xe6   :  { %v116_v38 = vpop.f32.mrb[0].mxu0 }
  0xe7   :  { %v117_v39 = vadd.f32 %v304_v37, %v116_v38  ;;  %v355_v40 = vpop.f32.mrb[1].mxu0 }
  0xe9   :  { %v120_v41 = vmax.f32 %v117_v39, 0.0 }
  0xeb   :  { %373 = vmatmul.mubr.msk.f32.vlgmr.msra.gmra.mrb[0].mxu1 %vm26_vm0, %v120_v41 }
 0x1be   :  { %v205_v46 = vpop.f32.mrb[0].mxu1 }
 0x1bf   :  { %v206_v47 = vadd.f32 %v306_v45, %v205_v46  ;;  %v374_v48 = vpop.f32.mrb[1].mxu1 }
 0x1c1   :  { %v209_v49 = vmax.f32 %v206_v47, 0.0 }
 0x1c3   :  { %392 = vmatmul.mubr.msk.f32.vlgmr.msra.gmra.mrb[2].mxu0 %vm26_vm0, %v209_v49 }
 0x296   :  { %v294_v51 = vpop.f32.mrb[2].mxu0 }
 0x297   :  { %v295_v52 = vadd.f32 %v308_v50, %v294_v51  ;;  %v393_v53 = vpop.f32.mrb[3].mxu0 }
 0x299   :  { %299 = vst.msk [vmem:[%s589_s7] sm:$0xff] %vm298_vm3, %v295_v52 }

</bundles_post_ra>
